<compile_context>
chip_gen: v5e
topology: v5e:2x2
jax: 0.10.0
libtpu: 0.0.40
codegen_flags: <defaults>
</compile_context>

<pallas_src>
import functools
import math

import jax
import jax.numpy as jnp
import numpy as np
from jax.experimental import pallas as pl
from jax.experimental.pallas import tpu as pltpu


def _time_mlp_kernel(t_ref, table_ref, phase_ref, w1_ref, b1_ref, w2_ref, b2_ref, out_ref):
    # t_ref:     (TB, 1)    f32   timestep per row
    # table_ref: (1, dim)   f32   lane k holds freq[k % half_dim]
    # phase_ref: (1, dim)   f32   0 on sin lanes, pi/2 on cos lanes (cos(x)=sin(x+pi/2))
    # w1_ref:    (dim, dim) bf16  first Linear weight, (in, out) layout
    # b1_ref:    (1, dim)   f32
    # w2_ref:    (dim, dim) bf16  second Linear weight, (in, out) layout
    # b2_ref:    (1, dim)   f32
    # out_ref:   (TB, dim)  f32
    args = t_ref[...] * table_ref[...] + phase_ref[...]          # (TB, dim) outer product
    emb = jnp.sin(args)                                           # [sin | cos] in one EUP pass

    # Linear -> SiLU -> Linear; bf16 MXU operands, f32 accumulate.
    h = jnp.dot(emb.astype(jnp.bfloat16), w1_ref[...],
                preferred_element_type=jnp.float32) + b1_ref[...]
    # SiLU: h * sigmoid(h); divide goes to the EUP via approx reciprocal.
    h = h * pl.reciprocal(1.0 + jnp.exp(-h), approx=True)
    out = jnp.dot(h.astype(jnp.bfloat16), w2_ref[...],
                  preferred_element_type=jnp.float32) + b2_ref[...]
    out_ref[...] = out.astype(out_ref.dtype)


@functools.lru_cache(maxsize=None)
def _host_tables(dim: int):
    """Static frequency table + per-lane phase offset, computed once per dim."""
    assert dim % 2 == 0 and dim >= 4, "dim must be even and >= 4"
    half = dim // 2
    scale = math.log(10000.0) / (half - 1)
    freq = np.exp(np.arange(half, dtype=np.float64) * -scale).astype(np.float32)   # (half,)
    table = np.tile(freq, 2).reshape(1, dim).astype(np.float32)    # lane k -> freq[k % half]
    phase = np.concatenate(
        [np.zeros(half, np.float32), np.full(half, np.pi / 2.0, np.float32)]
    ).reshape(1, dim)                                              # cos(x) = sin(x + pi/2)
    return table, phase


@jax.jit
def time_mlp(time: jax.Array, w1, b1, w2, b2) -> jax.Array:
    """Fused SinusoidalPositionEmbeddings -> Linear -> SiLU -> Linear.

    time: (B,) float; w1, w2: (dim, dim) in (in, out) layout (torch nn.Linear
    weights must be transposed); b1, b2: (dim,).  Returns (B, dim) float32
    (== DenoiseModel.time_mlp(t)).
    """
    dim = w1.shape[0]
    B = time.shape[0]
    table_np, phase_np = _host_tables(dim)          # baked as constants under jit
    table = jnp.asarray(table_np)
    phase = jnp.asarray(phase_np)
    t2d = time.astype(jnp.float32).reshape(B, 1)

    # bf16 MXU operands (no f32 upcast); callers that store bf16 params skip the cast.
    w1b = w1.astype(jnp.bfloat16)
    w2b = w2.astype(jnp.bfloat16)
    b1r = b1.astype(jnp.float32).reshape(1, dim)
    b2r = b2.astype(jnp.float32).reshape(1, dim)

    # Tile over batch: full-extent block for small B, 256-row blocks otherwise.
    # Partial last blocks are handled by masked output stores.
    TB = B if B < 256 else 256
    grid = (pl.cdiv(B, TB),)

    return pl.pallas_call(
        _time_mlp_kernel,
        out_shape=jax.ShapeDtypeStruct((B, dim), jnp.float32),
        grid=grid,
        in_specs=[
            pl.BlockSpec((TB, 1), lambda i: (i, 0)),      # timestep rows
            pl.BlockSpec((1, dim), lambda i: (0, 0)),     # freq table (VMEM-resident)
            pl.BlockSpec((1, dim), lambda i: (0, 0)),     # phase table
            pl.BlockSpec((dim, dim), lambda i: (0, 0)),   # w1 (bf16, resident)
            pl.BlockSpec((1, dim), lambda i: (0, 0)),     # b1
            pl.BlockSpec((dim, dim), lambda i: (0, 0)),   # w2 (bf16, resident)
            pl.BlockSpec((1, dim), lambda i: (0, 0)),     # b2
        ],
        out_specs=pl.BlockSpec((TB, dim), lambda i: (i, 0)),
        compiler_params=pltpu.CompilerParams(
            dimension_semantics=("parallel",)),           # v7x: shard batch across 2 TCs
    )(t2d, table, phase, w1b, b1r, w2b, b2r)


def _reference(time, w1, b1, w2, b2):
    """Pure-JAX replica of DenoiseModel.time_mlp (torch f32 semantics)."""
    dim = w1.shape[0]
    half = dim // 2
    scale = math.log(10000.0) / (half - 1)
    freq = jnp.exp(jnp.arange(half, dtype=jnp.float32) * -scale)
    emb = time.astype(jnp.float32)[:, None] * freq[None, :]
    emb = jnp.concatenate([jnp.sin(emb), jnp.cos(emb)], axis=-1)
    h = jnp.dot(emb, w1, precision=jax.lax.Precision.HIGHEST) + b1
    h = h * jax.nn.sigmoid(h)
    return jnp.dot(h, w2, precision=jax.lax.Precision.HIGHEST) + b2


if __name__ == "__main__":
    key = jax.random.PRNGKey(0)
    B = 2
    TIME_DIM = 256  # DenoiseModel default time_dim

    k_t, k_w1, k_b1, k_w2, k_b2 = jax.random.split(key, 5)
    # Diffusion timesteps are typically integers in [0, 1000); use floats there.
    time = jax.random.uniform(k_t, (B,), jnp.float32, minval=0.0, maxval=1000.0)
    w1 = jax.random.normal(k_w1, (TIME_DIM, TIME_DIM), jnp.float32) * 0.05
    b1 = jax.random.normal(k_b1, (TIME_DIM,), jnp.float32) * 0.05
    w2 = jax.random.normal(k_w2, (TIME_DIM, TIME_DIM), jnp.float32) * 0.05
    b2 = jax.random.normal(k_b2, (TIME_DIM,), jnp.float32) * 0.05

    out = jax.block_until_ready(time_mlp(time, w1, b1, w2, b2))
    ref = _reference(time, w1, b1, w2, b2)

    assert out.shape == (B, TIME_DIM)
    # Tolerance covers bf16 MXU operands + approx reciprocal vs. the
    # HIGHEST-precision f32 reference; structural bugs show up as O(0.1+) errors.
    err = float(jnp.max(jnp.abs(out - ref)))
    assert jnp.allclose(out, ref, atol=5e-2, rtol=5e-2), err

    print("KERNEL_OK")
</pallas_src>

<mosaic_0001>
module attributes {stable_mosaic.version = 11 : i64} {
  func.func @_time_mlp_kernel(%arg0: i32, %arg1: memref<2x1xf32, #tpu.memory_space<vmem>>, %arg2: memref<1x256xf32, #tpu.memory_space<vmem>>, %arg3: memref<1x256xf32, #tpu.memory_space<vmem>>, %arg4: memref<256x256xbf16, #tpu.memory_space<vmem>>, %arg5: memref<1x256xf32, #tpu.memory_space<vmem>>, %arg6: memref<256x256xbf16, #tpu.memory_space<vmem>>, %arg7: memref<1x256xf32, #tpu.memory_space<vmem>>, %arg8: memref<2x256xf32, #tpu.memory_space<vmem>>) attributes {dimension_semantics = [#tpu.dimension_semantics<parallel>], iteration_bounds = array<i64: 1>, scalar_prefetch = 0 : i64, scratch_operands = 0 : i64, tpu.core_type = #tpu.core_type<tc>, window_params = [{transform_indices = @transform_0, window_bounds = array<i64: 2, 1>}, {pipeline_mode = #tpu.pipeline_mode<synchronous>, transform_indices = @transform_1, window_bounds = array<i64: 1, 256>}, {pipeline_mode = #tpu.pipeline_mode<synchronous>, transform_indices = @transform_2, window_bounds = array<i64: 1, 256>}, {pipeline_mode = #tpu.pipeline_mode<synchronous>, transform_indices = @transform_3, window_bounds = array<i64: 256, 256>}, {pipeline_mode = #tpu.pipeline_mode<synchronous>, transform_indices = @transform_4, window_bounds = array<i64: 1, 256>}, {pipeline_mode = #tpu.pipeline_mode<synchronous>, transform_indices = @transform_5, window_bounds = array<i64: 256, 256>}, {pipeline_mode = #tpu.pipeline_mode<synchronous>, transform_indices = @transform_6, window_bounds = array<i64: 1, 256>}, {transform_indices = @transform_7, window_bounds = array<i64: 2, 256>}]} {
    %c0 = arith.constant 0 : index
    %c0_0 = arith.constant 0 : index
    %0 = vector.load %arg1[%c0, %c0_0] : memref<2x1xf32, #tpu.memory_space<vmem>>, vector<2x1xf32>
    %c0_1 = arith.constant 0 : index
    %c0_2 = arith.constant 0 : index
    %1 = vector.load %arg2[%c0_1, %c0_2] : memref<1x256xf32, #tpu.memory_space<vmem>>, vector<1x256xf32>
    %2 = vector.broadcast %0 : vector<2x1xf32> to vector<2x256xf32>
    %3 = vector.broadcast %1 : vector<1x256xf32> to vector<2x256xf32>
    %4 = arith.mulf %2, %3 : vector<2x256xf32>
    %c0_3 = arith.constant 0 : index
    %c0_4 = arith.constant 0 : index
    %5 = vector.load %arg3[%c0_3, %c0_4] : memref<1x256xf32, #tpu.memory_space<vmem>>, vector<1x256xf32>
    %6 = vector.broadcast %5 : vector<1x256xf32> to vector<2x256xf32>
    %7 = arith.addf %4, %6 : vector<2x256xf32>
    %8 = math.sin %7 : vector<2x256xf32>
    %9 = arith.truncf %8 : vector<2x256xf32> to vector<2x256xbf16>
    %c0_5 = arith.constant 0 : index
    %c0_6 = arith.constant 0 : index
    %10 = vector.load %arg4[%c0_5, %c0_6] : memref<256x256xbf16, #tpu.memory_space<vmem>>, vector<256x256xbf16>
    %cst = arith.constant dense<0.000000e+00> : vector<2x256xf32>
    %11 = tpu.matmul %9, %10, %cst {dimension_numbers = #tpu.dot_dimension_numbers<[1], [0], [0], [1], [0, 0, 1, 1], [], []>} : vector<2x256xbf16>, vector<256x256xbf16>, vector<2x256xf32> -> vector<2x256xf32>
    %c0_7 = arith.constant 0 : index
    %c0_8 = arith.constant 0 : index
    %12 = vector.load %arg5[%c0_7, %c0_8] : memref<1x256xf32, #tpu.memory_space<vmem>>, vector<1x256xf32>
    %13 = vector.broadcast %12 : vector<1x256xf32> to vector<2x256xf32>
    %14 = arith.addf %11, %13 : vector<2x256xf32>
    %cst_9 = arith.constant 0.000000e+00 : f32
    %15 = vector.broadcast %cst_9 : f32 to vector<2x256xf32>
    %16 = arith.subf %15, %14 : vector<2x256xf32>
    %17 = math.exp %16 : vector<2x256xf32>
    %cst_10 = arith.constant 1.000000e+00 : f32
    %18 = vector.broadcast %cst_10 : f32 to vector<2x256xf32>
    %19 = arith.addf %18, %17 : vector<2x256xf32>
    %20 = tpu.reciprocal %19 {approx = true} : vector<2x256xf32> -> vector<2x256xf32>
    %21 = arith.mulf %14, %20 : vector<2x256xf32>
    %22 = arith.truncf %21 : vector<2x256xf32> to vector<2x256xbf16>
    %c0_11 = arith.constant 0 : index
    %c0_12 = arith.constant 0 : index
    %23 = vector.load %arg6[%c0_11, %c0_12] : memref<256x256xbf16, #tpu.memory_space<vmem>>, vector<256x256xbf16>
    %cst_13 = arith.constant dense<0.000000e+00> : vector<2x256xf32>
    %24 = tpu.matmul %22, %23, %cst_13 {dimension_numbers = #tpu.dot_dimension_numbers<[1], [0], [0], [1], [0, 0, 1, 1], [], []>} : vector<2x256xbf16>, vector<256x256xbf16>, vector<2x256xf32> -> vector<2x256xf32>
    %c0_14 = arith.constant 0 : index
    %c0_15 = arith.constant 0 : index
    %25 = vector.load %arg7[%c0_14, %c0_15] : memref<1x256xf32, #tpu.memory_space<vmem>>, vector<1x256xf32>
    %26 = vector.broadcast %25 : vector<1x256xf32> to vector<2x256xf32>
    %27 = arith.addf %24, %26 : vector<2x256xf32>
    %c0_16 = arith.constant 0 : index
    %c0_17 = arith.constant 0 : index
    %28 = vector.load %arg8[%c0_16, %c0_17] : memref<2x256xf32, #tpu.memory_space<vmem>>, vector<2x256xf32>
    tpu.vector_store %arg8[%c0_16, %c0_17], %27 {strides = array<i32>} : memref<2x256xf32, #tpu.memory_space<vmem>>, vector<2x256xf32>,
    return
  }
  func.func @transform_0(%arg0: i32) -> (i32, i32) {
    %c0_i32 = arith.constant 0 : i32
    %c0_i32_0 = arith.constant 0 : i32
    return %arg0, %c0_i32 : i32, i32
  }
  func.func @transform_1(%arg0: i32) -> (i32, i32) {
    %c0_i32 = arith.constant 0 : i32
    %c0_i32_0 = arith.constant 0 : i32
    %c0_i32_1 = arith.constant 0 : i32
    return %c0_i32, %c0_i32_0 : i32, i32
  }
  func.func @transform_2(%arg0: i32) -> (i32, i32) {
    %c0_i32 = arith.constant 0 : i32
    %c0_i32_0 = arith.constant 0 : i32
    %c0_i32_1 = arith.constant 0 : i32
    return %c0_i32, %c0_i32_0 : i32, i32
  }
  func.func @transform_3(%arg0: i32) -> (i32, i32) {
    %c0_i32 = arith.constant 0 : i32
    %c0_i32_0 = arith.constant 0 : i32
    %c0_i32_1 = arith.constant 0 : i32
    return %c0_i32, %c0_i32_0 : i32, i32
  }
  func.func @transform_4(%arg0: i32) -> (i32, i32) {
    %c0_i32 = arith.constant 0 : i32
    %c0_i32_0 = arith.constant 0 : i32
    %c0_i32_1 = arith.constant 0 : i32
    return %c0_i32, %c0_i32_0 : i32, i32
  }
  func.func @transform_5(%arg0: i32) -> (i32, i32) {
    %c0_i32 = arith.constant 0 : i32
    %c0_i32_0 = arith.constant 0 : i32
    %c0_i32_1 = arith.constant 0 : i32
    return %c0_i32, %c0_i32_0 : i32, i32
  }
  func.func @transform_6(%arg0: i32) -> (i32, i32) {
    %c0_i32 = arith.constant 0 : i32
    %c0_i32_0 = arith.constant 0 : i32
    %c0_i32_1 = arith.constant 0 : i32
    return %c0_i32, %c0_i32_0 : i32, i32
  }
  func.func @transform_7(%arg0: i32) -> (i32, i32) {
    %c0_i32 = arith.constant 0 : i32
    %c0_i32_0 = arith.constant 0 : i32
    return %arg0, %c0_i32 : i32, i32
  }
}

</mosaic_0001>

<bundles_post_ra>
// kernel: time_mlp.1
= control target key start
LH: loop header
LB: loop body
LE: loop exit
PB: predicated region body
PF: predicated region fallthrough
CT: control target
= control target key end

     0   :  { %v1267_v1 = vmov 0   ;;  %s1907_s0 = inlined_call_operand.vmem [shape: f32[2,1], index: 0, kind: input, shape index: {}]   ;;  %s1908_s1 = inlined_call_operand.vmem [shape: f32[1,256], index: 1, kind: input, shape index: {}]   ;;  %s1909_s2 = inlined_call_operand.vmem [shape: f32[1,256], index: 2, kind: input, shape index: {}]   ;;  %s1910_s3 = inlined_call_operand.vmem [shape: bf16[256,256], index: 3, kind: input, shape index: {}]   ;;  %s1911_s4 = inlined_call_operand.vmem [shape: f32[1,256], index: 4, kind: input, shape index: {}]   ;;  %s1912_s5 = inlined_call_operand.vmem [shape: bf16[256,256], index: 5, kind: input, shape index: {}]   ;;  %s1913_s6 = inlined_call_operand.vmem [shape: f32[1,256], index: 6, kind: input, shape index: {}]   ;;  %s1914_s7 = inlined_call_operand.hbm [shape: f32[2,256], index: 7, kind: output, shape index: {}]  }
   0x1   :  { %v27_v0 = vld [vmem:[%s1907_s0] sm:$0x3]  ;;  %1232 = vset.pattern.permute.xlu0 %v1267_v1 }
   0x2   :  { %31 = vperm.xlu0 %1232, %v27_v0  }
   0x3   :  { %12 = vsyncpa [#allocation3], 0  ;;  %v28_v2 = vld [vmem:[%s1908_s1] sm:$0x3]  ;;  %v962_v8 = vld [vmem:[%s1910_s3 + $0x70] sm:$0xf] }
   0x4   :  { %v41_v3 = vld [vmem:[%s1909_s2] sm:$0x3]  ;;  %v35_v4 = vperm.slane %v28_v2, 0  ;;  %v36_v5 = vperm.slane %v28_v2, 1  ;;  %v1175_v9 = vld [vmem:[%s1910_s3 + $0x74] sm:$0xf0] }
   0x5   :  { %v43_v6 = vperm.slane %v41_v3, 0  ;;  %v44_v7 = vperm.slane %v41_v3, 1  ;;  %v1026_v10 = vld [vmem:[%s1910_s3 + $0xf0] sm:$0xf]  ;;  %v963_v11 = vor.u32 %v1175_v9, %v962_v8  ;;  %v1191_v12 = vld [vmem:[%s1910_s3 + $0xf4] sm:$0xf0] }
   0x6   :  { %v1174_v13 = vld [vmem:[%s1910_s3 + $0x74] sm:$0xf]  ;;  %v964_v14 = vld [vmem:[%s1910_s3 + $0x78] sm:$0xf0]  ;;  %v1027_v15 = vor.u32 %v1191_v12, %v1026_v10  ;;  %v954_v19 = vld [vmem:[%s1910_s3 + $0x60] sm:$0xf] }
   0x7   :  { %v967_v16 = vor.u32 %v1174_v13, %v964_v14  ;;  %v1190_v17 = vld [vmem:[%s1910_s3 + $0xf4] sm:$0xf]  ;;  %v1028_v18 = vld [vmem:[%s1910_s3 + $0xf8] sm:$0xf0]  ;;  %559 = vmatpush.bf16.msra.mxu0 %v963_v11  ;;  %v1173_v21 = vld [vmem:[%s1910_s3 + $0x64] sm:$0xf0] }
   0x8   :  { %v1031_v20 = vor.u32 %v1190_v17, %v1028_v18  ;;  %v1018_v22 = vld [vmem:[%s1910_s3 + $0xe0] sm:$0xf]  ;;  %v1189_v23 = vld [vmem:[%s1910_s3 + $0xe4] sm:$0xf0]  ;;  %572 = vmatpush.bf16.msra.mxu1 %v1027_v15  ;;  %v955_v24 = vor.u32 %v1173_v21, %v954_v19  ;;  %v1172_v26 = vld [vmem:[%s1910_s3 + $0x64] sm:$0xf] }
   0x9   :  { %585 = vmatpush.bf16.msra.mxu2 %v967_v16  ;;  %v1019_v25 = vor.u32 %v1189_v23, %v1018_v22  ;;  %v956_v27 = vld [vmem:[%s1910_s3 + $0x68] sm:$0xf0]  ;;  %v1188_v28 = vld [vmem:[%s1910_s3 + $0xe4] sm:$0xf]  ;;  %v946_v31 = vld [vmem:[%s1910_s3 + $0x50] sm:$0xf] }
   0xa   :  { %598 = vmatpush.bf16.msra.mxu3 %v1031_v20  ;;  %v959_v29 = vor.u32 %v1172_v26, %v956_v27  ;;  %v1020_v30 = vld [vmem:[%s1910_s3 + $0xe8] sm:$0xf0]  ;;  %v1171_v32 = vld [vmem:[%s1910_s3 + $0x54] sm:$0xf0]  ;;  %v1010_v34 = vld [vmem:[%s1910_s3 + $0xd0] sm:$0xf] }
   0xb   :  { %v1023_v33 = vor.u32 %v1188_v28, %v1020_v30  ;;  %v1187_v35 = vld [vmem:[%s1910_s3 + $0xd4] sm:$0xf0]  ;;  %v1170_v36 = vld [vmem:[%s1910_s3 + $0x54] sm:$0xf]  ;;  %560 = vmatpush.bf16.msra.mxu0 %v955_v24  ;;  %v947_v37 = vor.u32 %v1171_v32, %v946_v31  ;;  %v948_v38 = vld [vmem:[%s1910_s3 + $0x58] sm:$0xf0] }
   0xc   :  { %v1186_v39 = vld [vmem:[%s1910_s3 + $0xd4] sm:$0xf]  ;;  %v1012_v40 = vld [vmem:[%s1910_s3 + $0xd8] sm:$0xf0]  ;;  %573 = vmatpush.bf16.msra.mxu1 %v1019_v25  ;;  %v1011_v42 = vor.u32 %v1187_v35, %v1010_v34  ;;  %v951_v43 = vor.u32 %v1170_v36, %v948_v38  ;;  %v938_v44 = vld [vmem:[%s1910_s3 + $0x40] sm:$0xf] }
   0xd   :  { %586 = vmatpush.bf16.msra.mxu2 %v959_v29  ;;  %v1169_v45 = vld [vmem:[%s1910_s3 + $0x44] sm:$0xf0]  ;;  %v1002_v46 = vld [vmem:[%s1910_s3 + $0xc0] sm:$0xf]  ;;  %v1015_v49 = vor.u32 %v1186_v39, %v1012_v40  ;;  %v1168_v51 = vld [vmem:[%s1910_s3 + $0x44] sm:$0xf] }
   0xe   :  { %599 = vmatpush.bf16.msra.mxu3 %v1023_v33  ;;  %v1185_v50 = vld [vmem:[%s1910_s3 + $0xc4] sm:$0xf0]  ;;  %v940_v52 = vld [vmem:[%s1910_s3 + $0x48] sm:$0xf0]  ;;  %v1184_v53 = vld [vmem:[%s1910_s3 + $0xc4] sm:$0xf]  ;;  %v939_v57 = vor.u32 %v1169_v45, %v938_v44 }
   0xf   :  { %v1004_v54 = vld [vmem:[%s1910_s3 + $0xc8] sm:$0xf0]  ;;  %561 = vmatpush.bf16.msra.mxu0 %v947_v37  ;;  %v930_v58 = vld [vmem:[%s1910_s3 + $0x30] sm:$0xf]  ;;  %v1003_v59 = vor.u32 %v1185_v50, %v1002_v46  ;;  %v943_v60 = vor.u32 %v1168_v51, %v940_v52  ;;  %v1167_v61 = vld [vmem:[%s1910_s3 + $0x34] sm:$0xf0] }
  0x10   :  { %574 = vmatpush.bf16.msra.mxu1 %v1011_v42  ;;  %v994_v62 = vld [vmem:[%s1910_s3 + $0xb0] sm:$0xf]  ;;  %v1183_v63 = vld [vmem:[%s1910_s3 + $0xb4] sm:$0xf0]  ;;  %v1007_v3 = vor.u32 %v1184_v53, %v1004_v54  ;;  %v931_v10 = vor.u32 %v1167_v61, %v930_v58  ;;  %v922_v11 = vld [vmem:[%s1910_s3 + $0x20] sm:$0xf] }
  0x11   :  { %587 = vmatpush.bf16.msra.mxu2 %v951_v43  ;;  %v995_v12 = vor.u32 %v1183_v63, %v994_v62  ;;  %v1165_v14 = vld [vmem:[%s1910_s3 + $0x24] sm:$0xf0]  ;;  %v986_v15 = vld [vmem:[%s1910_s3 + $0xa0] sm:$0xf]  ;;  %v1164_v20 = vld [vmem:[%s1910_s3 + $0x24] sm:$0xf] }
  0x12   :  { %600 = vmatpush.bf16.msra.mxu3 %v1015_v49  ;;  %v1181_v16 = vld [vmem:[%s1910_s3 + $0xa4] sm:$0xf0]  ;;  %v924_v21 = vld [vmem:[%s1910_s3 + $0x28] sm:$0xf0]  ;;  %v1180_v22 = vld [vmem:[%s1910_s3 + $0xa4] sm:$0xf]  ;;  %v923_v27 = vor.u32 %v1165_v14, %v922_v11 }
  0x13   :  { %562 = vmatpush.bf16.msra.mxu0 %v939_v57  ;;  %v988_v23 = vld [vmem:[%s1910_s3 + $0xa8] sm:$0xf0]  ;;  %v914_v24 = vld [vmem:[%s1910_s3 + $0x10] sm:$0xf]  ;;  %v1163_v28 = vld [vmem:[%s1910_s3 + $0x14] sm:$0xf0]  ;;  %v987_v30 = vor.u32 %v1181_v16, %v986_v15  ;;  %v927_v31 = vor.u32 %v1164_v20, %v924_v21 }
  0x14   :  { %575 = vmatpush.bf16.msra.mxu1 %v1003_v59  ;;  %v978_v29 = vld [vmem:[%s1910_s3 + $0x90] sm:$0xf]  ;;  %v1179_v32 = vld [vmem:[%s1910_s3 + $0x94] sm:$0xf0]  ;;  %v1162_v33 = vld [vmem:[%s1910_s3 + $0x14] sm:$0xf]  ;;  %v991_v35 = vor.u32 %v1180_v22, %v988_v23  ;;  %v915_v44 = vor.u32 %v1163_v28, %v914_v24 }
  0x15   :  { %588 = vmatpush.bf16.msra.mxu2 %v943_v60  ;;  %v916_v34 = vld [vmem:[%s1910_s3 + $0x18] sm:$0xf0]  ;;  %v1178_v36 = vld [vmem:[%s1910_s3 + $0x94] sm:$0xf]  ;;  %v906_v40 = vld [vmem:[%s1910_s3] sm:$0xf] }
  0x16   :  { %601 = vmatpush.bf16.msra.mxu3 %v1007_v3  ;;  %v980_v37 = vld [vmem:[%s1910_s3 + $0x98] sm:$0xf0]  ;;  %v970_v45 = vld [vmem:[%s1910_s3 + $0x80] sm:$0xf]  ;;  %v1177_v46 = vld [vmem:[%s1910_s3 + $0x84] sm:$0xf0] }
  0x17   :  { %563 = vmatpush.bf16.msra.mxu0 %v931_v10  ;;  %v983_v52 = vor.u32 %v1178_v36, %v980_v37  ;;  %v1160_v53 = vld [vmem:[%s1910_s3 + $0x4] sm:$0xf]  ;;  %v908_v54 = vld [vmem:[%s1910_s3 + $0x8] sm:$0xf0]  ;;  %v1268_v57 = vmov 920167782   ;;  %v971_v60 = vor.u32 %v1177_v46, %v970_v45 }
  0x18   :  { %576 = vmatpush.bf16.msra.mxu1 %v995_v12  ;;  %v1176_v61 = vld [vmem:[%s1910_s3 + $0x84] sm:$0xf]  ;;  %v972_v62 = vld [vmem:[%s1910_s3 + $0x88] sm:$0xf0]  ;;  %v1272_v15 = vmov 2475754826  }
  0x19   :  { %v975_v10 = vor.u32 %v1176_v61, %v972_v62  ;;  %v1273_v23 = vmov 2131351028   ;;  %s1274_s21 = smov [#allocation2]   ;;  %s889_s25 = sshll.u32 %s1914_s7, 4  ;;  %s890_s25 = int_to_ptr.hbm [resolvable:$true] %s889_s25 }
  0x1a   :  { %s887_s22 = sshll.u32 %s1274_s21, 4  ;;  %s888_s22 = int_to_ptr.vmem [resolvable:$true] %s887_s22 }
  0x1b   :  { %564 = vmatpush.bf16.msra.mxu0 %v923_v27 }
  0x1c   :  { %577 = vmatpush.bf16.msra.mxu1 %v987_v30 }
  0x1f   :  { %565 = vmatpush.bf16.msra.mxu0 %v915_v44 }
  0x74   :  { %v32_v41 = vpop.permute.xlu0 %31 }
  0x75   :  { %v39_v47 = vmul.f32 %v35_v4, %v32_v41  ;;  %v40_v48 = vmul.f32 %v36_v5, %v32_v41  ;;  %v1166_v4 = vld [vmem:[%s1910_s3 + $0x34] sm:$0xf]  ;;  %v932_v5 = vld [vmem:[%s1910_s3 + $0x38] sm:$0xf0]  ;;  %v1161_v41 = vld [vmem:[%s1910_s3 + $0x4] sm:$0xf0] }
  0x76   :  { %v935_v13 = vor.u32 %v1166_v4, %v932_v5  ;;  %v907_v59 = vor.u32 %v1161_v41, %v906_v40  ;;  %v1270_v5 = vmov 2102212464  }
  0x77   :  { %v1421_v55 = vadd.f32 %v43_v6, %v39_v47  ;;  %v1423_v56 = vadd.f32 %v44_v7, %v40_v48  ;;  %v1182_v6 = vld [vmem:[%s1910_s3 + $0xb4] sm:$0xf]  ;;  %v996_v7 = vld [vmem:[%s1910_s3 + $0xb8] sm:$0xf0]  ;;  %v979_v47 = vor.u32 %v1179_v32, %v978_v29  ;;  %v919_v48 = vor.u32 %v1162_v33, %v916_v34 }
  0x78   :  { %v999_v19 = vor.u32 %v1182_v6, %v996_v7  ;;  %589 = vmatpush.bf16.msra.mxu2 %v935_v13  ;;  %v1271_v13 = vmov 683565275   ;;  %566 = vmatpush.bf16.msra.mxu0 %v907_v59 }
  0x79   :  { %v52_v0 = vand.u32 2139095040, %v1421_v55  ;;  %v207_v2 = vand.u32 2139095040, %v1423_v56  ;;  %v49_v49 = vand.u32 2147483647, %v1421_v55  ;;  %578 = vmatpush.bf16.msra.mxu1 %v979_v47  ;;  %v204_v33 = vand.u32 2147483647, %v1423_v56 }
  0x7a   :  { %602 = vmatpush.bf16.msra.mxu3 %v999_v19 }
  0x7b   :  { %v53_v8 = vshrl.u32 %v52_v0, 23  ;;  %v208_v9 = vshrl.u32 %v207_v2, 23  ;;  %v1269_v0 = vmov 1326507024   ;;  %v56_v4 = vand.u32 8388607, %v49_v49 }
  0x7c   :  { %590 = vmatpush.bf16.msra.mxu2 %v927_v31  ;;  %v211_v45 = vand.u32 8388607, %v204_v33 }
  0x7d   :  { %v898_v17 = vadd.s32 4294967169, %v53_v8  ;;  %v901_v18 = vadd.s32 4294967169, %v208_v9  ;;  %v911_v8 = vor.u32 %v1160_v53, %v908_v54  ;;  %v57_v12 = vor.u32 8388608, %v56_v4  ;;  %579 = vmatpush.bf16.msra.mxu1 %v971_v60 }
  0x7e   :  { %603 = vmatpush.bf16.msra.mxu3 %v991_v35 }
  0x7f   :  { %v59_v25 = vadd.s32 1, %v898_v17  ;;  %v214_v26 = vadd.s32 1, %v901_v18  ;;  %v1554_v30 = vshll.u32 %v57_v12, 8 }
  0x80   :  { %591 = vmatpush.bf16.msra.mxu2 %v919_v48 }
  0x81   :  { %vm60_vm0 = vcmp.gt.s32.totalorder %v59_v25, 0  ;;  %vm215_vm1 = vcmp.gt.s32.totalorder %v214_v26, 0  ;;  %v98_v40 = vand.u32 65535, %v1554_v30  ;;  %v99_v46 = vshrl.u32 %v1554_v30, 16 }
  0x82   :  { %v61_v38 = vsel %vm60_vm0, %v59_v25, 0  ;;  %v216_v39 = vsel %vm215_vm1, %v214_v26, 0  ;;  %604 = vmatpush.bf16.msra.mxu3 %v983_v52 }
  0x83   :  { %v63_v42 = vand.u32 31, %v61_v38  ;;  %v1505_v43 = vand.u32 31, %v216_v39  ;;  %v1514_v50 = vshrl.u32 %v61_v38, 5  ;;  %v1534_v7 = vshrl.u32 %v216_v39, 5 }
  0x84   :  { %592 = vmatpush.bf16.msra.mxu2 %v911_v8 }
  0x85   :  { %v64_v51 = vsub.s32 32, %v63_v42  ;;  %v78_v58 = vshll.u32 %v1268_v57, %v63_v42  ;;  %v1529_v3 = vsub.s32 32, %v1505_v43  ;;  %v75_v6 = vshll.u32 %v1270_v5, %v63_v42 }
  0x86   :  { %vm84_vm2 = vcmp.lt.s32.totalorder %v1514_v50, 4  ;;  %v66_v14 = vshll.u32 %v1271_v13, %v63_v42  ;;  %v230_v17 = vshll.u32 %v1270_v5, %v1505_v43  ;;  %v69_v22 = vshll.u32 %v1272_v15, %v63_v42  ;;  %605 = vmatpush.bf16.msra.mxu3 %v975_v10 }
  0x87   :  { %v76_v63 = vshrl.u32 %v1268_v57, %v64_v51  ;;  %v79_v2 = vshrl.u32 %v1269_v0, %v64_v51  ;;  %v67_v16 = vshrl.u32 %v1272_v15, %v64_v51  ;;  %v231_v18 = vshrl.u32 %v1268_v57, %v1529_v3 }
  0x88   :  { %v234_v19 = vshrl.u32 %v1269_v0, %v1529_v3  ;;  %v70_v24 = vshrl.u32 %v1273_v23, %v64_v51  ;;  %v233_v25 = vshll.u32 %v1268_v57, %v1505_v43  ;;  %vm239_vm3 = vcmp.lt.s32.totalorder %v1534_v7, 4 }
  0x89   :  { %v80_v9 = vor.u32 %v79_v2, %v78_v58  ;;  %v77_v11 = vor.u32 %v76_v63, %v75_v6  ;;  %v68_v21 = vor.u32 %v67_v16, %v66_v14  ;;  %v72_v26 = vshll.u32 %v1273_v23, %v63_v42 }
  0x8a   :  { %v73_v27 = vshrl.u32 %v1270_v5, %v64_v51  ;;  %v71_v29 = vor.u32 %v70_v24, %v69_v22  ;;  %vm83_vm4 = vcmp.lt.s32.totalorder %v1514_v50, 3  ;;  %vm81_vm5 = vcmp.lt.s32.totalorder %v1514_v50, 1 }
  0x8b   :  { %v94_v20 = vsel %vm84_vm2, %v80_v9, 1326507024  ;;  %v90_v28 = vsel %vm84_vm2, %v77_v11, 920167782  ;;  %v1560_v34 = vor.u32 %v231_v18, %v230_v17  ;;  %v235_v35 = vor.u32 %v234_v19, %v233_v25 }
  0x8c   :  { %v74_v31 = vor.u32 %v73_v27, %v72_v26  ;;  %v95_v32 = vsel %vm83_vm4, %v77_v11, %v94_v20  ;;  %v65_v36 = vshrl.u32 %v1271_v13, %v64_v51  ;;  %v89_v37 = vsel %vm81_vm5, %v68_v21, %v71_v29 }
  0x8d   :  { %vm82_vm6 = vcmp.lt.s32.totalorder %v1514_v50, 2  ;;  %v245_v52 = vsel %vm239_vm3, %v1560_v34, 920167782  ;;  %v249_v53 = vsel %vm239_vm3, %v235_v35, 1326507024  ;;  %v212_v63 = vor.u32 8388608, %v211_v45 }
  0x8e   :  { %v91_v38 = vsel %vm83_vm4, %v74_v31, %v90_v28  ;;  %v93_v39 = vsel %vm81_vm5, %v71_v29, %v74_v31  ;;  %v86_v41 = vsel %vm84_vm2, %v74_v31, 2102212464  ;;  %v85_v57 = vsel %vm81_vm5, %v65_v36, %v68_v21 }
  0x8f   :  { %v92_v42 = vsel %vm82_vm6, %v89_v37, %v91_v38  ;;  %v96_v44 = vsel %vm82_vm6, %v93_v39, %v95_v32  ;;  %v87_v58 = vsel %vm83_vm4, %v71_v29, %v86_v41  ;;  %v221_v0 = vshll.u32 %v1271_v13, %v1505_v43 }
  0x90   :  { %v100_v47 = vand.u32 65535, %v96_v44  ;;  %v101_v48 = vshrl.u32 %v96_v44, 16  ;;  %v122_v51 = vand.u32 65535, %v92_v42  ;;  %v123_v54 = vshrl.u32 %v92_v42, 16 }
  0x91   :  { %v222_v17 = vshrl.u32 %v1272_v15, %v1529_v3  ;;  %v225_v20 = vshrl.u32 %v1273_v23, %v1529_v3  ;;  %v224_v24 = vshll.u32 %v1272_v15, %v1505_v43  ;;  %v227_v37 = vshll.u32 %v1273_v23, %v1505_v43 }
  0x92   :  { %v103_v59 = vmul.u32 %v101_v48, %v98_v40  ;;  %v104_v60 = vmul.u32 %v100_v47, %v99_v46  ;;  %v125_v61 = vmul.u32 %v123_v54, %v98_v40  ;;  %v126_v62 = vmul.u32 %v122_v51, %v99_v46 }
  0x93   :  { %v102_v2 = vmul.u32 %v100_v47, %v98_v40  ;;  %v105_v4 = vmul.u32 %v101_v48, %v99_v46  ;;  %v124_v8 = vmul.u32 %v122_v51, %v98_v40  ;;  %v127_v11 = vmul.u32 %v123_v54, %v99_v46 }
  0x94   :  { %v106_v6 = vshll.u32 %v103_v59, 16  ;;  %v107_v9 = vshrl.u32 %v103_v59, 16  ;;  %v108_v10 = vshll.u32 %v104_v60, 16  ;;  %v128_v12 = vshll.u32 %v125_v61, 16 }
  0x95   :  { %v130_v16 = vshll.u32 %v126_v62, 16  ;;  %v1600_v27 = vor.u32 %v222_v17, %v221_v0  ;;  %v109_v28 = vshrl.u32 %v104_v60, 16  ;;  %v1603_v32 = vor.u32 %v225_v20, %v224_v24 }
  0x96   :  { %vm110_vm7 = vc.u32 %v102_v2, %v106_v6  ;;  %v112_v14 = vadd.s32 %v106_v6, %v102_v2  ;;  %vm132_vm8 = vc.u32 %v124_v8, %v128_v12  ;;  %v134_v19 = vadd.s32 %v128_v12, %v124_v8 }
  0x97   :  { %v111_v18 = vsel %vm110_vm7, 1, %v1267_v1  ;;  %v133_v22 = vsel %vm132_vm8, 1, %v1267_v1  ;;  %v129_v35 = vshrl.u32 %v125_v61, 16  ;;  %v228_v15 = vshrl.u32 %v1270_v5, %v1529_v3 }
  0x98   :  { %v113_v21 = vadd.s32 %v111_v18, %v105_v4  ;;  %vm114_vm9 = vc.u32 %v112_v14, %v108_v10  ;;  %v135_v26 = vadd.s32 %v133_v22, %v127_v11  ;;  %vm136_vm10 = vc.u32 %v134_v19, %v130_v16 }
  0x99   :  { %v115_v25 = vsel %vm114_vm9, 1, %v1267_v1  ;;  %v137_v31 = vsel %vm136_vm10, 1, %v1267_v1  ;;  %v131_v39 = vshrl.u32 %v126_v62, 16  ;;  %vm236_vm11 = vcmp.lt.s32.totalorder %v1534_v7, 1 }
  0x9a   :  { %v117_v29 = vadd.s32 %v115_v25, %v113_v21  ;;  %v139_v36 = vadd.s32 %v137_v31, %v135_v26  ;;  %vm238_vm12 = vcmp.lt.s32.totalorder %v1534_v7, 3  ;;  %v229_v41 = vor.u32 %v228_v15, %v227_v37 }
  0x9b   :  { %v244_v42 = vsel %vm236_vm11, %v1600_v27, %v1603_v32  ;;  %v1615_v44 = vshll.u32 %v212_v63, 8  ;;  %v88_v43 = vsel %vm82_vm6, %v85_v57, %v87_v58  ;;  %v1621_v5 = vadd.s32 %v134_v19, %v130_v16 }
  0x9c   :  { %v118_v38 = vadd.s32 %v117_v29, %v107_v9  ;;  %v140_v40 = vadd.s32 %v139_v36, %v129_v35  ;;  %v250_v45 = vsel %vm238_vm12, %v1560_v34, %v249_v53  ;;  %vm237_vm13 = vcmp.lt.s32.totalorder %v1534_v7, 2 }
  0x9d   :  { %v246_v47 = vsel %vm238_vm12, %v229_v41, %v245_v52  ;;  %v248_v48 = vsel %vm236_vm11, %v1603_v32, %v229_v41  ;;  %v142_v51 = vmul.u32 %v1554_v30, %v88_v43  ;;  %v253_v53 = vand.u32 65535, %v1615_v44 }
  0x9e   :  { %v1619_v23 = vadd.s32 %v118_v38, %v109_v28  ;;  %v141_v46 = vadd.s32 %v140_v40, %v131_v39  ;;  %v247_v50 = vsel %vm237_vm13, %v244_v42, %v246_v47  ;;  %v251_v34 = vsel %vm237_vm13, %v248_v48, %v250_v45 }
  0x9f   :  { %v254_v52 = vshrl.u32 %v1615_v44, 16  ;;  %v255_v57 = vand.u32 65535, %v251_v34  ;;  %v256_v58 = vshrl.u32 %v251_v34, 16  ;;  %v277_v59 = vand.u32 65535, %v247_v50 }
  0xa0   :  { %vm144_vm14 = vc.u32 %v1619_v23, %v1621_v5  ;;  %v145_v54 = vadd.s32 1, %v141_v46  ;;  %v278_v61 = vshrl.u32 %v247_v50, 16  ;;  %v220_v35 = vshrl.u32 %v1271_v13, %v1529_v3 }
  0xa1   :  { %v258_v63 = vmul.u32 %v256_v58, %v253_v53  ;;  %v259_v0 = vmul.u32 %v255_v57, %v254_v52  ;;  %v281_v4 = vmul.u32 %v277_v59, %v254_v52  ;;  %v257_v30 = vmul.u32 %v255_v57, %v253_v53 }
  0xa2   :  { %v146_v60 = vsel %vm144_vm14, %v145_v54, %v141_v46  ;;  %v280_v2 = vmul.u32 %v278_v61, %v253_v53  ;;  %v260_v9 = vmul.u32 %v256_v58, %v254_v52  ;;  %v279_v10 = vmul.u32 %v277_v59, %v253_v53 }
  0xa3   :  { %v147_v62 = vadd.s32 %v146_v60, %v142_v51  ;;  %v261_v8 = vshll.u32 %v258_v63, 16  ;;  %v263_v14 = vshll.u32 %v259_v0, 16  ;;  %v285_v18 = vshll.u32 %v281_v4, 16 }
  0xa4   :  { %v283_v11 = vshll.u32 %v280_v2, 16  ;;  %v282_v22 = vmul.u32 %v278_v61, %v254_v52  ;;  %v262_v28 = vshrl.u32 %v258_v63, 16  ;;  %v241_v36 = vsel %vm239_vm3, %v229_v41, 2102212464 }
  0xa5   :  { %v148_v6 = vadd.s32 536870912, %v147_v62  ;;  %vm265_vm15 = vc.u32 %v257_v30, %v261_v8  ;;  %v267_v16 = vadd.s32 %v261_v8, %v257_v30  ;;  %v264_v38 = vshrl.u32 %v259_v0, 16 }
  0xa6   :  { %v266_v17 = vsel %vm265_vm15, 1, %v1267_v1  ;;  %vm287_vm0 = vc.u32 %v279_v10, %v283_v11  ;;  %v289_v19 = vadd.s32 %v283_v11, %v279_v10  ;;  %v284_v40 = vshrl.u32 %v280_v2, 16 }
  0xa7   :  { %v1641_v12 = vshrl.u32 %v148_v6, 30  ;;  %v268_v21 = vadd.s32 %v266_v17, %v260_v9  ;;  %vm269_vm1 = vc.u32 %v267_v16, %v263_v14  ;;  %v288_v25 = vsel %vm287_vm0, 1, %v1267_v1 }
  0xa8   :  { %v270_v24 = vsel %vm269_vm1, 1, %v1267_v1  ;;  %vm291_vm2 = vc.u32 %v289_v19, %v285_v18  ;;  %v290_v31 = vadd.s32 %v288_v25, %v282_v22  ;;  %v240_v45 = vsel %vm236_vm11, %v220_v35, %v1600_v27 }
  0xa9   :  { %v150_v20 = vshll.u32 %v1641_v12, 30  ;;  %v272_v29 = vadd.s32 %v270_v24, %v268_v21  ;;  %v292_v37 = vsel %vm291_vm2, 1, %v1267_v1  ;;  %v242_v3 = vsel %vm238_vm12, %v1603_v32, %v241_v36 }
  0xaa   :  { %v294_v42 = vadd.s32 %v292_v37, %v290_v31  ;;  %v286_v41 = vshrl.u32 %v281_v4, 16  ;;  %v293_v1 = vadd.s32 %v289_v19, %v285_v18  ;;  %v243_v50 = vsel %vm237_vm13, %v240_v45, %v242_v3 }
  0xab   :  { %v151_v26 = vsub.s32 %v147_v62, %v150_v20  ;;  %v273_v39 = vadd.s32 %v272_v29, %v262_v28  ;;  %v297_v27 = vmul.u32 %v1615_v44, %v243_v50  ;;  %v143_v53 = vadd.s32 %v1621_v5, %v1619_v23 }
  0xac   :  { %v295_v47 = vadd.s32 %v294_v42, %v284_v40  ;;  %v173_v9 = vsub.s32 4, %v1641_v12  ;;  %vm51_vm7 = vcmp.lt.s32.totalorder %v1421_v55, 0  ;;  %vm1670_vm8 = vcmp.le.f32.partialorder %v49_v49, 0.7853982 }
  0xad   :  { %vm152_vm4 = vcmp.lt.s32.totalorder %v151_v26, 0  ;;  %v153_v15 = vsub.s32 0, %v151_v26  ;;  %v274_v13 = vadd.s32 %v273_v39, %v264_v38  ;;  %vm206_vm13 = vcmp.lt.s32.totalorder %v1423_v56, 0 }
  0xae   :  { %v296_v51 = vadd.s32 %v295_v47, %v286_v41  ;;  %v174_v18 = vsel %vm51_vm7, %v173_v9, %v1641_v12  ;;  %vm192_vm14 = vweird.f32 %v1421_v55  ;;  %vm1696_vm15 = vcmp.le.f32.partialorder %v204_v33, 0.7853982 }
  0xaf   :  { %v154_v43 = vsel %vm152_vm4, %v153_v15, %v151_v26  ;;  %vm299_vm3 = vc.u32 %v274_v13, %v293_v1  ;;  %v176_v24 = vsel %vm1670_vm8, 0, %v174_v18  ;;  %v298_v28 = vadd.s32 %v293_v1, %v274_v13  ;;  %v1090_v13 = vld [vmem:[%s1912_s5 + $0x70] sm:$0xf]  ;;  %v1207_v1 = vld [vmem:[%s1912_s5 + $0x74] sm:$0xf0] }
  0xb0   :  { %v155_v46 = vclz %v154_v43  ;;  %v300_v54 = vadd.s32 1, %v296_v51  ;;  %v193_v15 = vadd.s32 3, %v176_v24  ;;  %vm347_vm4 = vweird.f32 %v1423_v56 }
  0xb2   :  { %v899_v48 = vadd.s32 4294967294, %v155_v46  ;;  %v301_v57 = vsel %vm299_vm3, %v300_v54, %v296_v51  ;;  %v194_v46 = vand.u32 3, %v193_v15  ;;  %v1091_v54 = vor.u32 %v1207_v1, %v1090_v13  ;;  %v1076_v13 = vld [vmem:[%s1912_s5 + $0x58] sm:$0xf0] }
  0xb3   :  { %v302_v58 = vadd.s32 %v301_v57, %v297_v27  ;;  %v1092_v27 = vld [vmem:[%s1912_s5 + $0x78] sm:$0xf0]  ;;  %vm878_vm3 = vcmask 1041408  }
  0xb4   :  { %vm900_vm5 = vcmp.lt.s32.totalorder %v899_v48, 0  ;;  %823 = vmatpush.bf16.msrb.mxu0 %v1091_v54  ;;  %vm196_vm10 = vcmp.eq.s32.totalorder %v194_v46, 0  ;;  %vm199_vm11 = vcmp.eq.s32.totalorder %v194_v46, 2  ;;  %vm195_vm12 = vcmp.lt.s32.totalorder %v194_v46, 2  ;;  %v1074_v46 = vld [vmem:[%s1912_s5 + $0x50] sm:$0xf] }
  0xb5   :  { %v158_v34 = vsel %vm900_vm5, 0, %v899_v48  ;;  %v303_v62 = vadd.s32 536870912, %v302_v58 }
  0xb6   :  { %v159_v32 = vsub.s32 32, %v158_v34  ;;  %v163_v52 = vsub.s32 4294967266, %v158_v34  ;;  %v160_v59 = vshll.u32 %v151_v26, %v158_v34  ;;  %v1206_v34 = vld [vmem:[%s1912_s5 + $0x74] sm:$0xf] }
  0xb7   :  { %v1663_v0 = vshrl.u32 %v303_v62, 30 }
  0xb8   :  { %v161_v60 = vshrl.u32 %v143_v53, %v159_v32  ;;  %v164_v61 = vadd.s32 127, %v163_v52  ;;  %v1095_v52 = vor.u32 %v1206_v34, %v1092_v27  ;;  %v1220_v34 = vld [vmem:[%s1912_s5 + $0xe4] sm:$0xf]  ;;  %v1148_v27 = vld [vmem:[%s1912_s5 + $0xe8] sm:$0xf0] }
  0xb9   :  { %v305_v4 = vshll.u32 %v1663_v0, 30 }
  0xba   :  { %v162_v7 = vor.u32 %v161_v60, %v160_v59  ;;  %v165_v63 = vshll.u32 %v164_v61, 23  ;;  %849 = vmatpush.bf16.msrb.mxu2 %v1095_v52  ;;  %v1201_v52 = vld [vmem:[%s1912_s5 + $0x44] sm:$0xf0] }
  0xbb   :  { %v306_v30 = vsub.s32 %v302_v58, %v305_v4  ;;  %v328_v4 = vsub.s32 4, %v1663_v0 }
  0xbc   :  { %v166_v2 = vor.u32 4788187, %v165_v63  ;;  %v169_v44 = vcvt.s32.f32 %v162_v7  ;;  %v1219_v7 = vld [vmem:[%s1912_s5 + $0xd4] sm:$0xf0] }
  0xbd   :  { %vm307_vm6 = vcmp.lt.s32.totalorder %v306_v30, 0  ;;  %v308_v23 = vsub.s32 0, %v306_v30 }
  0xbe   :  { %v167_v6 = vand.u32 2147483647, %v166_v2 }
  0xbf   :  { %v309_v10 = vsel %vm307_vm6, %v308_v23, %v306_v30  ;;  %v329_v23 = vsel %vm206_vm13, %v328_v4, %v1663_v0 }
  0xc0   :  { %v170_v8 = vmul.f32 %v169_v44, %v167_v6  ;;  %v310_v16 = vclz %v309_v10  ;;  %v331_v9 = vsel %vm1696_vm15, 0, %v329_v23  ;;  %v1796_v23 = vld [vmem:[%s1911_s4] sm:$0x3] }
  0xc2   :  { %v171_v5 = vxor.u32 2147483648, %v170_v8  ;;  %v902_v20 = vadd.s32 4294967294, %v310_v16 }
  0xc4   :  { %v172_v14 = vsel %vm51_vm7, %v171_v5, %v170_v8  ;;  %vm903_vm9 = vcmp.lt.s32.totalorder %v902_v20, 0 }
  0xc5   :  { %v175_v17 = vsel %vm1670_vm8, %v1421_v55, %v172_v14  ;;  %v313_v49 = vsel %vm903_vm9, 0, %v902_v20 }
  0xc6   :  { %v177_v19 = vmul.f32 %v175_v17, %v175_v17  ;;  %v314_v29 = vsub.s32 32, %v313_v49  ;;  %v318_v31 = vsub.s32 4294967266, %v313_v49  ;;  %v315_v38 = vshll.u32 %v306_v30, %v313_v49 }
  0xc8   :  { %v178_v21 = vmul.f32 -0.001358992, %v177_v19  ;;  %v185_v22 = vmul.f32 -0.00019511016, %v177_v19  ;;  %v316_v37 = vshrl.u32 %v298_v28, %v314_v29  ;;  %v319_v12 = vadd.s32 127, %v318_v31 }
  0xca   :  { %v179_v25 = vadd.f32 0.041655596, %v178_v21  ;;  %v186_v26 = vadd.f32 0.008332121, %v185_v22  ;;  %v317_v42 = vor.u32 %v316_v37, %v315_v38  ;;  %v320_v43 = vshll.u32 %v319_v12, 23 }
  0xcb   :  { %v1204_v37 = vld [vmem:[%s1912_s5 + $0x64] sm:$0xf]  ;;  %v1154_v12 = vld [vmem:[%s1912_s5 + $0xf0] sm:$0xf] }
  0xcc   :  { %v180_v35 = vmul.f32 %v179_v25, %v177_v19  ;;  %v187_v36 = vmul.f32 %v186_v26, %v177_v19  ;;  %v321_v41 = vor.u32 4788187, %v320_v43  ;;  %v324_v51 = vcvt.s32.f32 %v317_v42 }
  0xce   :  { %v181_v39 = vadd.f32 -0.4999988, %v180_v35  ;;  %v188_v40 = vadd.f32 -0.16666654, %v187_v36  ;;  %v322_v50 = vand.u32 2147483647, %v321_v41 }
  0xcf   :  { %v1082_v35 = vld [vmem:[%s1912_s5 + $0x60] sm:$0xf]  ;;  %v1205_v36 = vld [vmem:[%s1912_s5 + $0x64] sm:$0xf0]  ;;  %v1203_v41 = vld [vmem:[%s1912_s5 + $0x54] sm:$0xf0] }
  0xd0   :  { %v182_v45 = vmul.f32 %v181_v39, %v177_v19  ;;  %v189_v3 = vmul.f32 %v188_v40, %v177_v19  ;;  %v325_v57 = vmul.f32 %v324_v51, %v322_v50  ;;  %v1083_v15 = vor.u32 %v1205_v36, %v1082_v35  ;;  %v1223_v39 = vld [vmem:[%s1912_s5 + $0xf4] sm:$0xf0]  ;;  %v1222_v40 = vld [vmem:[%s1912_s5 + $0xf4] sm:$0xf]  ;;  %v1146_v50 = vld [vmem:[%s1912_s5 + $0xe0] sm:$0xf] }
  0xd1   :  { %v1155_v43 = vor.u32 %v1223_v39, %v1154_v12  ;;  %v1221_v51 = vld [vmem:[%s1912_s5 + $0xe4] sm:$0xf0]  ;;  %v1124_v35 = vld [vmem:[%s1912_s5 + $0xb8] sm:$0xf0]  ;;  %v396_v12 = vperm.slane %v1796_v23, 1 }
  0xd2   :  { %v183_v47 = vadd.f32 1.0, %v182_v45  ;;  %v190_v48 = vadd.f32 1.0, %v189_v3  ;;  %v326_v59 = vxor.u32 2147483648, %v325_v57  ;;  %824 = vmatpush.bf16.msrb.mxu0 %v1083_v15  ;;  %v1156_v45 = vld [vmem:[%s1912_s5 + $0xf8] sm:$0xf0]  ;;  %v1147_v54 = vor.u32 %v1221_v51, %v1146_v50 }
  0xd3   :  { %v1159_v3 = vor.u32 %v1222_v40, %v1156_v45  ;;  %836 = vmatpush.bf16.msrb.mxu1 %v1155_v43  ;;  %v1195_v15 = vld [vmem:[%s1912_s5 + $0x14] sm:$0xf0]  ;;  %v1044_v40 = vld [vmem:[%s1912_s5 + $0x18] sm:$0xf0]  ;;  %v1114_v45 = vld [vmem:[%s1912_s5 + $0xa0] sm:$0xf] }
  0xd4   :  { %v191_v53 = vmul.f32 %v190_v48, %v175_v17  ;;  %v200_v32 = vxor.u32 2147483648, %v183_v47  ;;  %v327_v63 = vsel %vm206_vm13, %v326_v59, %v325_v57  ;;  %v348_v17 = vadd.s32 3, %v331_v9  ;;  %v1200_v57 = vld [vmem:[%s1912_s5 + $0x44] sm:$0xf] }
  0xd5   :  { %v330_v6 = vsel %vm1696_vm15, %v1423_v56, %v327_v63  ;;  %v1084_v56 = vld [vmem:[%s1912_s5 + $0x68] sm:$0xf0]  ;;  %v1075_v48 = vor.u32 %v1203_v41, %v1074_v46  ;;  %862 = vmatpush.bf16.msrb.mxu3 %v1159_v3  ;;  %v1218_v63 = vld [vmem:[%s1912_s5 + $0xd4] sm:$0xf]  ;;  %v1213_v3 = vld [vmem:[%s1912_s5 + $0xa4] sm:$0xf0] }
  0xd6   :  { %v197_v58 = vxor.u32 2147483648, %v191_v53  ;;  %v201_v61 = vsel %vm199_vm11, %v200_v32, %v191_v53  ;;  %v332_v30 = vmul.f32 %v330_v6, %v330_v6  ;;  %v349_v22 = vand.u32 3, %v348_v17  ;;  %v1066_v32 = vld [vmem:[%s1912_s5 + $0x40] sm:$0xf]  ;;  %v1132_v17 = vld [vmem:[%s1912_s5 + $0xc8] sm:$0xf0] }
  0xd7   :  { %v1087_v38 = vor.u32 %v1204_v37, %v1084_v56  ;;  %825 = vmatpush.bf16.msrb.mxu0 %v1075_v48  ;;  %v1151_v53 = vor.u32 %v1220_v34, %v1148_v27  ;;  %837 = vmatpush.bf16.msrb.mxu1 %v1147_v54  ;;  %v1067_v59 = vor.u32 %v1201_v52, %v1066_v32  ;;  %v1042_v37 = vld [vmem:[%s1912_s5 + $0x10] sm:$0xf]  ;;  %v1194_v56 = vld [vmem:[%s1912_s5 + $0x14] sm:$0xf]  ;;  %v1116_v41 = vld [vmem:[%s1912_s5 + $0xa8] sm:$0xf0] }
  0xd8   :  { %v198_v60 = vsel %vm196_vm10, %v183_v47, %v197_v58  ;;  %v333_v8 = vmul.f32 -0.001358992, %v332_v30  ;;  %v340_v55 = vmul.f32 -0.00019511016, %v332_v30  ;;  %vm351_vm0 = vcmp.eq.s32.totalorder %v349_v22, 0 }
  0xd9   :  { %v202_v62 = vsel %vm195_vm12, %v198_v60, %v201_v61  ;;  %vm354_vm1 = vcmp.eq.s32.totalorder %v349_v22, 2  ;;  %vm350_vm2 = vcmp.lt.s32.totalorder %v349_v22, 2  ;;  %850 = vmatpush.bf16.msrb.mxu2 %v1087_v38  ;;  %v1202_v47 = vld [vmem:[%s1912_s5 + $0x54] sm:$0xf]  ;;  %v1068_v60 = vld [vmem:[%s1912_s5 + $0x48] sm:$0xf0]  ;;  %863 = vmatpush.bf16.msrb.mxu3 %v1151_v53  ;;  %v1043_v39 = vor.u32 %v1195_v15, %v1042_v37 }
  0xda   :  { %v203_v2 = vsel %vm192_vm14, nan, %v202_v62  ;;  %v334_v33 = vadd.f32 0.041655596, %v333_v8  ;;  %v341_v5 = vadd.f32 0.008332121, %v340_v55  ;;  %v1079_v1 = vor.u32 %v1202_v47, %v1076_v13 }
  0xdb   :  { %v359_v44 = vpack.c.bf16 %v203_v2, %v203_v2  ;;  %v1071_v61 = vor.u32 %v1200_v57, %v1068_v60  ;;  %v1138_v62 = vld [vmem:[%s1912_s5 + $0xd0] sm:$0xf]  ;;  %826 = vmatpush.bf16.msrb.mxu0 %v1067_v59  ;;  %v1199_v8 = vld [vmem:[%s1912_s5 + $0x34] sm:$0xf0]  ;;  %v1198_v55 = vld [vmem:[%s1912_s5 + $0x34] sm:$0xf]  ;;  %v1047_v43 = vor.u32 %v1194_v56, %v1044_v40  ;;  %v1115_v46 = vor.u32 %v1213_v3, %v1114_v45 }
  0xdc   :  { %v335_v10 = vmul.f32 %v334_v33, %v332_v30  ;;  %v342_v11 = vmul.f32 %v341_v5, %v332_v30  ;;  %v1139_v4 = vor.u32 %v1219_v7, %v1138_v62  ;;  %v1060_v5 = vld [vmem:[%s1912_s5 + $0x38] sm:$0xf0]  ;;  %v395_v22 = vperm.slane %v1796_v23, 0  ;;  %v1034_v47 = vld [vmem:[%s1912_s5] sm:$0xf] }
  0xdd   :  { %567 = vmatmul.bf16.vlgmr.msra.gmra.mxu0 %v359_v44  ;;  %593 = vmatmul.bf16.vlgmr.msra.gmra.mxu2 %v359_v44  ;;  %v1063_v9 = vor.u32 %v1198_v55, %v1060_v5  ;;  %v1193_v48 = vld [vmem:[%s1912_s5 + $0x4] sm:$0xf0]  ;;  %v1192_v51 = vld [vmem:[%s1912_s5 + $0x4] sm:$0xf]  ;;  %v1036_v54 = vld [vmem:[%s1912_s5 + $0x8] sm:$0xf0] }
  0xde   :  { %v336_v14 = vadd.f32 -0.4999988, %v335_v10  ;;  %v343_v16 = vadd.f32 -0.16666654, %v342_v11  ;;  %851 = vmatpush.bf16.msrb.mxu2 %v1079_v1  ;;  %838 = vmatpush.bf16.msrb.mxu1 %v1139_v4  ;;  %v1130_v10 = vld [vmem:[%s1912_s5 + $0xc0] sm:$0xf]  ;;  %v1035_v50 = vor.u32 %v1193_v48, %v1034_v47  ;;  %v1039_v53 = vor.u32 %v1192_v51, %v1036_v54 }
  0xdf   :  { %v1217_v11 = vld [vmem:[%s1912_s5 + $0xc4] sm:$0xf0]  ;;  %v1106_v34 = vld [vmem:[%s1912_s5 + $0x90] sm:$0xf]  ;;  %v1211_v32 = vld [vmem:[%s1912_s5 + $0x94] sm:$0xf0] }
  0xe0   :  { %v337_v18 = vmul.f32 %v336_v14, %v332_v30  ;;  %v344_v19 = vmul.f32 %v343_v16, %v332_v30  ;;  %v1058_v30 = vld [vmem:[%s1912_s5 + $0x30] sm:$0xf]  ;;  %v1216_v14 = vld [vmem:[%s1912_s5 + $0xc4] sm:$0xf]  ;;  %v1131_v16 = vor.u32 %v1217_v11, %v1130_v10  ;;  %v1210_v52 = vld [vmem:[%s1912_s5 + $0x94] sm:$0xf]  ;;  %v1107_v59 = vor.u32 %v1211_v32, %v1106_v34 }
  0xe1   :  { %v1059_v33 = vor.u32 %v1199_v8, %v1058_v30  ;;  %v1108_v57 = vld [vmem:[%s1912_s5 + $0x98] sm:$0xf0]  ;;  %v1209_v62 = vld [vmem:[%s1912_s5 + $0x84] sm:$0xf0]  ;;  %v1100_v4 = vld [vmem:[%s1912_s5 + $0x88] sm:$0xf0] }
  0xe2   :  { %v338_v20 = vadd.f32 1.0, %v337_v18  ;;  %v345_v21 = vadd.f32 1.0, %v344_v19  ;;  %852 = vmatpush.bf16.msrb.mxu2 %v1071_v61  ;;  %v1135_v18 = vor.u32 %v1216_v14, %v1132_v17  ;;  %v1050_v19 = vld [vmem:[%s1912_s5 + $0x20] sm:$0xf]  ;;  %839 = vmatpush.bf16.msrb.mxu1 %v1131_v16  ;;  %v1111_v60 = vor.u32 %v1210_v52, %v1108_v57 }
  0xe3   :  { %827 = vmatpush.bf16.msrb.mxu0 %v1059_v33  ;;  %v1098_v61 = vld [vmem:[%s1912_s5 + $0x80] sm:$0xf] }
  0xe4   :  { %v346_v24 = vmul.f32 %v345_v21, %v330_v6  ;;  %v355_v49 = vxor.u32 2147483648, %v338_v20  ;;  %v1140_v6 = vld [vmem:[%s1912_s5 + $0xd8] sm:$0xf0]  ;;  %v1196_v21 = vld [vmem:[%s1912_s5 + $0x24] sm:$0xf] }
  0xe5   :  { %v1143_v44 = vor.u32 %v1218_v63, %v1140_v6 }
  0xe6   :  { %v352_v25 = vxor.u32 2147483648, %v346_v24  ;;  %v356_v26 = vsel %vm354_vm1, %v355_v49, %v346_v24  ;;  %853 = vmatpush.bf16.msrb.mxu2 %v1063_v9 }
  0xe7   :  { %864 = vmatpush.bf16.msrb.mxu3 %v1143_v44  ;;  %v1099_v44 = vor.u32 %v1209_v62, %v1098_v61 }
  0xe8   :  { %v353_v0 = vsel %vm351_vm0, %v338_v20, %v352_v25  ;;  %v1197_v20 = vld [vmem:[%s1912_s5 + $0x24] sm:$0xf0]  ;;  %v1052_v25 = vld [vmem:[%s1912_s5 + $0x28] sm:$0xf0] }
  0xe9   :  { %v357_v28 = vsel %vm350_vm2, %v353_v0, %v356_v26  ;;  %v1051_v49 = vor.u32 %v1197_v20, %v1050_v19  ;;  %v1055_v0 = vor.u32 %v1196_v21, %v1052_v25  ;;  %v1122_v26 = vld [vmem:[%s1912_s5 + $0xb0] sm:$0xf] }
  0xea   :  { %v358_v29 = vsel %vm347_vm4, nan, %v357_v28  ;;  %v1215_v28 = vld [vmem:[%s1912_s5 + $0xb4] sm:$0xf0] }
  0xeb   :  { %v360_v31 = vpack.c.bf16 %v358_v29, %v358_v29  ;;  %865 = vmatpush.bf16.msrb.mxu3 %v1135_v18  ;;  %v1214_v29 = vld [vmem:[%s1912_s5 + $0xb4] sm:$0xf]  ;;  %828 = vmatpush.bf16.msrb.mxu0 %v1051_v49 }
  0xec   :  { %854 = vmatpush.bf16.msrb.mxu2 %v1055_v0  ;;  %v1127_v36 = vor.u32 %v1214_v29, %v1124_v35 }
  0xed   :  { %580 = vmatmul.bf16.vlgmr.msra.gmra.mxu1 %v360_v31  ;;  %606 = vmatmul.bf16.vlgmr.msra.gmra.mxu3 %v360_v31  ;;  %v1123_v31 = vor.u32 %v1215_v28, %v1122_v26 }
  0xef   :  { %840 = vmatpush.bf16.msrb.mxu1 %v1123_v31  ;;  %866 = vmatpush.bf16.msrb.mxu3 %v1127_v36 }
  0xf0   :  { %829 = vmatpush.bf16.msrb.mxu0 %v1043_v39  ;;  %855 = vmatpush.bf16.msrb.mxu2 %v1047_v43 }
  0xf3   :  { %841 = vmatpush.bf16.msrb.mxu1 %v1115_v46 }
  0xf4   :  { %830 = vmatpush.bf16.msrb.mxu0 %v1035_v50  ;;  %856 = vmatpush.bf16.msrb.mxu2 %v1039_v53 }
  0xf7   :  { %842 = vmatpush.bf16.msrb.mxu1 %v1107_v59 }
  0xfb   :  { %843 = vmatpush.bf16.msrb.mxu1 %v1099_v44 }
 0x15a   :  { %v1729_v42 = vpop.f32.mrf.mxu0 }
 0x15b   :  { %v569_v38 = vadd.f32 %v1729_v42, %v395_v22  ;;  %v1212_v42 = vld [vmem:[%s1912_s5 + $0xa4] sm:$0xf] }
 0x15c   :  { %v1119_v1 = vor.u32 %v1212_v42, %v1116_v41 }
 0x15e   :  { %867 = vmatpush.bf16.msrb.mxu3 %v1119_v1 }
 0x160   :  { %v1767_v58 = vpop.f32.mrf.mxu2 }
 0x161   :  { %v595_v63 = vadd.f32 %v1767_v58, %v396_v12 }
 0x162   :  { %v570_v2 = vpop.f32.mrf.mxu0  ;;  %868 = vmatpush.bf16.msrb.mxu3 %v1111_v60 }
 0x163   :  { %v1208_v2 = vld [vmem:[%s1912_s5 + $0x84] sm:$0xf] }
 0x164   :  { %v1103_v8 = vor.u32 %v1208_v2, %v1100_v4 }
 0x166   :  { %869 = vmatpush.bf16.msrb.mxu3 %v1103_v8 }
 0x168   :  { %v596_v24 = vpop.f32.mrf.mxu2 }
 0x169   :  { %v657_v24 = vld [vmem:[%s1913_s6] sm:$0x3] }
 0x16a   :  { %v581_v13 = vpop.f32.mrf.mxu1  ;;  %v660_v0 = vperm.slane %v657_v24, 1  ;;  %v659_v28 = vperm.slane %v657_v24, 0 }
 0x16b   :  { %v582_v27 = vadd.f32 %v581_v13, %v569_v38 }
 0x16d   :  { %v611_v7 = vsub.f32 0.0, %v582_v27 }
 0x16f   :  { %v613_v6 = vmul.f32 1.442695, %v611_v7 }
 0x170   :  { %v607_v30 = vpop.f32.mrf.mxu3 }
 0x171   :  { %1233 = vpow2.f32 %v613_v6  ;;  %v608_v55 = vadd.f32 %v607_v30, %v595_v63 }
 0x172   :  { %v583_v23 = vpop.f32.mrf.mxu1 }
 0x173   :  { %v612_v58 = vsub.f32 0.0, %v608_v55 }
 0x175   :  { %v615_v33 = vmul.f32 1.442695, %v612_v58 }
 0x177   :  { %v1234_v5 = vpop.eup %1233  ;;  %1235 = vpow2.f32 %v615_v33 }
 0x178   :  { %v617_v9 = vadd.f32 1.0, %v1234_v5  ;;  %v609_v10 = vpop.f32.mrf.mxu3 }
 0x17a   :  { %1237 = vrcp.f32 %v617_v9 }
 0x17d   :  { %v1236_v11 = vpop.eup %1235 }
 0x17e   :  { %v618_v14 = vadd.f32 1.0, %v1236_v11 }
 0x180   :  { %v1238_v16 = vpop.eup %1237  ;;  %1239 = vrcp.f32 %v618_v14 }
 0x181   :  { %v621_v17 = vmul.f32 %v1238_v16, %v582_v27 }
 0x183   :  { %v623_v18 = vpack.c.bf16 %v621_v17, %v621_v17 }
 0x185   :  { %831 = vmatmul.bf16.vlgmr.msrb.gmra.mxu0 %v623_v18  ;;  %857 = vmatmul.bf16.vlgmr.msrb.gmra.mxu2 %v623_v18 }
 0x186   :  { %v1240_v19 = vpop.eup %1239 }
 0x187   :  { %v622_v20 = vmul.f32 %v1240_v19, %v608_v55 }
 0x189   :  { %v624_v21 = vpack.c.bf16 %v622_v20, %v622_v20 }
 0x18b   :  { %844 = vmatmul.bf16.vlgmr.msrb.gmra.mxu1 %v624_v21  ;;  %870 = vmatmul.bf16.vlgmr.msrb.gmra.mxu3 %v624_v21 }
 0x202   :  { %v832_v22 = vpop.f32.mrf.mxu0 }
 0x203   :  { %v833_v35 = vadd.f32 %v832_v22, %v659_v28 }
 0x208   :  { %v845_v49 = vpop.f32.mrf.mxu1  ;;  %v858_v25 = vpop.f32.mrf.mxu2 }
 0x209   :  { %v859_v29 = vadd.f32 %v858_v25, %v660_v0  ;;  %v846_v56 = vadd.f32 %v845_v49, %v833_v35 }
 0x20a   :  { %v834_v26 = vpop.f32.mrf.mxu0 }
 0x20e   :  { %v871_v31 = vpop.f32.mrf.mxu3 }
 0x20f   :  { %v872_v36 = vadd.f32 %v871_v31, %v859_v29 }
 0x210   :  { %v847_v37 = vpop.f32.mrf.mxu1  ;;  %v860_v15 = vpop.f32.mrf.mxu2 }
 0x211   :  { %v877_v38 = vrot.slane %v872_v36, 6 }
 0x213   :  { %v879_v12 = vsel %vm878_vm3, %v846_v56, %v877_v38 }
 0x214   :  { %881 = vst [vmem:[#allocation2] sm:$0xf] %v879_v12 }
 0x215   :  { %892 = dma.vmem_to_hbm [thread:$0]  %s888_s22, 64, %s890_s25, [#allocation3]  }
 0x216   :  { %v873_v39 = vpop.f32.mrf.mxu3 }
 0x217   :  { %1265 = dma.done.wait [#allocation3], 64  }
 0x218   :  { %1266 = vsyncadd [#allocation3], 4294967232 }
 0x219   :  { %897 = vsyncpa [#allocation3], 1 }

</bundles_post_ra>
